<compile_context>
chip_gen: v7x
topology: tpu7x:2x2x1
jax: 0.10.0
libtpu: 0.0.40
codegen_flags: <defaults>
</compile_context>

<pallas_src>
import functools

import jax
import jax.numpy as jnp
from jax.experimental import pallas as pl
from jax.experimental.pallas import tpu as pltpu


# ----------------------------------------------------------------------------
# Pallas kernel.
#
# Per grid step the kernel sees (R rows = flattened batch*heads, T lanes =
# tile of the flattened S*D axis):
#   x_ref   : (R, T)  input slab
#   cos_ref : (R, T)  f32 cos table, duplicated across each (even, odd) pair
#   sin_ref : (R, T)  f32 sin table, sign-folded: -sin at even lanes, +sin at odd
#   o_ref   : (R, T)  output slab
#
#   out = x * cos_dup + swap(x) * sin_signed
# where swap() exchanges each adjacent (2k, 2k+1) lane pair.  T is always even
# (multiple of 128 or the padded full axis), so pairs never straddle a tile and
# the roll wrap-around lanes are never selected by the parity mask.
# ----------------------------------------------------------------------------
def _rope_kernel(x_ref, cos_ref, sin_ref, o_ref):
    x = x_ref[...].astype(jnp.float32)     # (R, T)
    c = cos_ref[...]                       # (R, T) f32
    s = sin_ref[...]                       # (R, T) f32

    t = x.shape[-1]
    # roll(+1)[i] = x[i-1] (wanted at odd lanes); roll(t-1)[i] = x[i+1] (even lanes).
    x_dn = pltpu.roll(x, shift=1, axis=1)
    x_up = pltpu.roll(x, shift=t - 1, axis=1)
    lane = jax.lax.broadcasted_iota(jnp.int32, (1, t), 1)
    x_swap = jnp.where((lane & 1) == 1, x_dn, x_up)

    o_ref[...] = (x * c + x_swap * s).astype(o_ref.dtype)


# ----------------------------------------------------------------------------
# Cached table builder (hoisted off the per-call path).
# Returns f32 tables of shape [reps*H, sd_pad]:
#   cos duplicated per (even, odd) pair, sin duplicated and sign-folded
#   (-sin at even lanes, +sin at odd lanes), the H-row pattern tiled `reps`
#   times so it lines up with a row tile of R = reps*H flattened (b, h) rows.
# ----------------------------------------------------------------------------
@functools.lru_cache(maxsize=64)
def _rope_tables(H: int, S: int, D: int, base: int, reps: int, sd_pad: int):
    dim = H * D                               # module's `dim`: heads AND head_dim
    half = D // 2
    theta = 1.0 / (base ** (jnp.arange(0, dim, 2, dtype=jnp.float32)[: dim // 2] / dim))
    theta_hd = theta.reshape(H, half)                                   # [H, D/2]
    pos = jnp.arange(S, dtype=jnp.float32)                              # [S]
    ang = pos[None, :, None] * theta_hd[:, None, :]                     # [H, S, D/2]
    sign = jnp.tile(jnp.array([-1.0, 1.0], dtype=jnp.float32), half)    # [D]: -,+,-,+,...
    cos_p = jnp.repeat(jnp.cos(ang), 2, axis=-1).reshape(H, S * D)
    sin_p = (jnp.repeat(jnp.sin(ang), 2, axis=-1) * sign).reshape(H, S * D)
    if sd_pad > S * D:
        pad = ((0, 0), (0, sd_pad - S * D))
        cos_p = jnp.pad(cos_p, pad)
        sin_p = jnp.pad(sin_p, pad)
    return jnp.tile(cos_p, (reps, 1)), jnp.tile(sin_p, (reps, 1))


# ----------------------------------------------------------------------------
# Cache builder used by the pure-JAX reference (mirrors _build_rope_cache).
# ----------------------------------------------------------------------------
def build_rope_cache(dim: int, max_seq_len: int = 256, base: int = 10000):
    theta = 1.0 / (base ** (jnp.arange(0, dim, 2, dtype=jnp.float32)[: dim // 2] / dim))
    seq_idx = jnp.arange(max_seq_len, dtype=jnp.float32)
    idx_theta = jnp.einsum("i,j->ij", seq_idx, theta)                   # [L, dim//2]
    return jnp.stack([jnp.cos(idx_theta), jnp.sin(idx_theta)], axis=-1)


# ----------------------------------------------------------------------------
# Wrapper.
# ----------------------------------------------------------------------------
@functools.partial(jax.jit, static_argnames=("max_seq_len", "base"))
def rotary_pos_embed(x, *, max_seq_len: int = 256, base: int = 10000):
    """x: [B, num_heads, S, head_dim] -> [B, num_heads, S, head_dim]."""
    B, H, S, D = x.shape
    if D % 2 != 0:
        raise ValueError("head_dim must be even for RoPE")
    if S > max_seq_len:
        raise ValueError(f"sequence length {S} exceeds max_seq_len {max_seq_len}")

    SD = S * D
    BH = B * H
    xb = jnp.dtype(x.dtype).itemsize
    tb = 4  # cos/sin kept in f32 (matches the torch f32 cache)

    # Lane axis padded to a 128 multiple -> full-width vst, bounded VMEM.
    sd_pad = ((SD + 127) // 128) * 128

    # ---- tile sizing: ~16 MiB double-buffered working set -------------------
    # per element: (x + out) double-buffered + (cos + sin) double-buffered.
    budget = 16 * 1024 * 1024
    bytes_per_elem = 2 * (2 * xb + 2 * tb)
    max_elems = max(8 * 128, budget // bytes_per_elem)

    sub = max(8, 32 // xb)               # sublanes per vreg: 8 f32, 16 bf16
    prov_rows = min(BH, max(sub, H))     # provisional row count, only to size T
    t_cap = max(128, ((max_elems // prov_rows) // 128) * 128)
    if sd_pad <= t_cap:
        T = sd_pad
    else:
        # Largest 128-multiple divisor of sd_pad that fits the cap (128 always works).
        # TODO(synk): huge S*D with awkward factorization falls back to small T;
        # acceptable for this module (S <= max_seq_len = 256).
        T = 128
        for cand in range(t_cap, 127, -128):
            if sd_pad % cand == 0:
                T = cand
                break

    # Row tile: multiple of H dividing B*H, multiple of 8 (or the full row axis),
    # as large as the element budget allows -> full sublane packing for small H.
    row_cap = max(H, max_elems // T)
    candidates = [k * H for k in range(1, B + 1) if B % k == 0]
    valid = [r for r in candidates if (r % 8 == 0) or (r == BH)]
    fits = [r for r in valid if r <= row_cap]
    R = max(fits) if fits else min(valid)

    n_t, n_r = sd_pad // T, BH // R
    # v7x has two TensorCores: if everything landed in one block but the tensor
    # is big enough to amortize an extra grid step, split the trailing axis.
    if n_t * n_r == 1 and T % 256 == 0 and BH * sd_pad * xb >= (2 << 20):
        T //= 2
        n_t = sd_pad // T

    reps = R // H
    cos_t, sin_t = _rope_tables(H, S, D, base, reps, sd_pad)

    # Free reshape (merges contiguous dims); pad lanes only if S*D is unaligned.
    x2 = x.reshape(BH, SD)
    if sd_pad != SD:
        x2 = jnp.pad(x2, ((0, 0), (0, sd_pad - SD)))

    x_spec = pl.BlockSpec((R, T), lambda t, r: (r, t))
    tbl_spec = pl.BlockSpec((R, T), lambda t, r: (0, t))  # constant over inner r -> resident

    out2 = pl.pallas_call(
        _rope_kernel,
        out_shape=jax.ShapeDtypeStruct((BH, sd_pad), x.dtype),
        grid=(n_t, n_r),                  # rows innermost: table block reused across rows
        in_specs=[x_spec, tbl_spec, tbl_spec],
        out_specs=x_spec,
        compiler_params=pltpu.CompilerParams(
            dimension_semantics=("parallel", "parallel"),
            vmem_limit_bytes=32 * 1024 * 1024,
        ),
    )(x2, cos_t, sin_t)

    if sd_pad != SD:
        out2 = out2[:, :SD]
    return out2.reshape(B, H, S, D)


# ----------------------------------------------------------------------------
# Pure-JAX reference (direct transcription of the PyTorch forward).
# ----------------------------------------------------------------------------
def rotary_pos_embed_ref(x, *, max_seq_len: int = 256, base: int = 10000):
    B, H, S, D = x.shape
    dim = H * D
    cache = build_rope_cache(dim, max_seq_len, base)
    xp = jnp.transpose(x, (0, 2, 1, 3))                                 # [B, S, H, D]
    rope = cache[:S].reshape(1, S, H, D // 2, 2)
    xs = xp.astype(jnp.float32).reshape(B, S, H, D // 2, 2)
    out = jnp.stack(
        [
            xs[..., 0] * rope[..., 0] - xs[..., 1] * rope[..., 1],
            xs[..., 1] * rope[..., 0] + xs[..., 0] * rope[..., 1],
        ],
        axis=-1,
    ).reshape(B, S, H, D)
    return jnp.transpose(out, (0, 2, 1, 3)).astype(x.dtype)


if __name__ == "__main__":
    key = jax.random.PRNGKey(0)
    B, num_heads, S, head_dim = 2, 4, 16, 16       # dim = num_heads*head_dim = 64
    x = jax.random.normal(key, (B, num_heads, S, head_dim), dtype=jnp.float32)

    out = jax.block_until_ready(rotary_pos_embed(x))
    ref = jax.block_until_ready(rotary_pos_embed_ref(x))

    assert out.shape == x.shape and out.dtype == x.dtype
    assert jnp.allclose(out, ref, atol=1e-5, rtol=1e-5)

    print("KERNEL_OK")
</pallas_src>

<mosaic_0001>
module attributes {stable_mosaic.version = 11 : i64} {
  func.func @_rope_kernel(%arg0: i32, %arg1: i32, %arg2: memref<8x256xf32, #tpu.memory_space<vmem>>, %arg3: memref<8x256xf32, #tpu.memory_space<vmem>>, %arg4: memref<8x256xf32, #tpu.memory_space<vmem>>, %arg5: memref<8x256xf32, #tpu.memory_space<vmem>>) attributes {dimension_semantics = [#tpu.dimension_semantics<parallel>, #tpu.dimension_semantics<parallel>], iteration_bounds = array<i64: 1, 1>, scalar_prefetch = 0 : i64, scratch_operands = 0 : i64, tpu.core_type = #tpu.core_type<tc>, window_params = [{transform_indices = @transform_0, window_bounds = array<i64: 8, 256>}, {transform_indices = @transform_1, window_bounds = array<i64: 8, 256>}, {transform_indices = @transform_2, window_bounds = array<i64: 8, 256>}, {transform_indices = @transform_3, window_bounds = array<i64: 8, 256>}]} {
    %c0 = arith.constant 0 : index
    %c0_0 = arith.constant 0 : index
    %0 = vector.load %arg2[%c0, %c0_0] : memref<8x256xf32, #tpu.memory_space<vmem>>, vector<8x256xf32>
    %c0_1 = arith.constant 0 : index
    %c0_2 = arith.constant 0 : index
    %1 = vector.load %arg3[%c0_1, %c0_2] : memref<8x256xf32, #tpu.memory_space<vmem>>, vector<8x256xf32>
    %c0_3 = arith.constant 0 : index
    %c0_4 = arith.constant 0 : index
    %2 = vector.load %arg4[%c0_3, %c0_4] : memref<8x256xf32, #tpu.memory_space<vmem>>, vector<8x256xf32>
    %c1_i32 = arith.constant 1 : i32
    %3 = tpu.dynamic_rotate %0 by %c1_i32 dim 1 : vector<8x256xf32>, i32 -> vector<8x256xf32>
    %c255_i32 = arith.constant 255 : i32
    %4 = tpu.dynamic_rotate %0 by %c255_i32 dim 1 : vector<8x256xf32>, i32 -> vector<8x256xf32>
    %5 = tpu.iota {dimensions = array<i32: 1>} : vector<1x256xi32>
    %c1_i32_5 = arith.constant 1 : i32
    %6 = vector.broadcast %c1_i32_5 : i32 to vector<1x256xi32>
    %7 = arith.andi %5, %6 : vector<1x256xi32>
    %c1_i32_6 = arith.constant 1 : i32
    %8 = vector.broadcast %c1_i32_6 : i32 to vector<1x256xi32>
    %9 = arith.cmpi eq, %7, %8 : vector<1x256xi32>
    %10 = vector.shape_cast %9 : vector<1x256xi1> to vector<1x256xi1>
    %11 = vector.broadcast %10 : vector<1x256xi1> to vector<8x256xi1>
    %12 = arith.select %11, %3, %4 : vector<8x256xi1>, vector<8x256xf32>
    %13 = arith.mulf %0, %1 : vector<8x256xf32>
    %14 = arith.mulf %12, %2 : vector<8x256xf32>
    %15 = arith.addf %13, %14 : vector<8x256xf32>
    %c0_7 = arith.constant 0 : index
    %c0_8 = arith.constant 0 : index
    %16 = vector.load %arg5[%c0_7, %c0_8] : memref<8x256xf32, #tpu.memory_space<vmem>>, vector<8x256xf32>
    tpu.vector_store %arg5[%c0_7, %c0_8], %15 {strides = array<i32>} : memref<8x256xf32, #tpu.memory_space<vmem>>, vector<8x256xf32>,
    return
  }
  func.func @transform_0(%arg0: i32, %arg1: i32) -> (i32, i32) {
    %c0_i32 = arith.constant 0 : i32
    return %arg1, %arg0 : i32, i32
  }
  func.func @transform_1(%arg0: i32, %arg1: i32) -> (i32, i32) {
    %c0_i32 = arith.constant 0 : i32
    %c0_i32_0 = arith.constant 0 : i32
    return %c0_i32, %arg0 : i32, i32
  }
  func.func @transform_2(%arg0: i32, %arg1: i32) -> (i32, i32) {
    %c0_i32 = arith.constant 0 : i32
    %c0_i32_0 = arith.constant 0 : i32
    return %c0_i32, %arg0 : i32, i32
  }
  func.func @transform_3(%arg0: i32, %arg1: i32) -> (i32, i32) {
    %c0_i32 = arith.constant 0 : i32
    return %arg1, %arg0 : i32, i32
  }
}

</mosaic_0001>

<bundles_post_ra>
// kernel: tile.19
= control target key start
LH: loop header
LB: loop body
LE: loop exit
PB: predicated region body
PF: predicated region fallthrough
CT: control target
= control target key end

     0   :  { %s76_s0 = inlined_call_operand.vmem [shape: f32[2,4,256], index: 0, kind: input, shape index: {}]   ;;  %s77_s1 = inlined_call_operand.vmem [shape: f32[8,256], index: 1, kind: output, shape index: {}]  }
   0x1   :  { %v36_v0 = vld [vmem:[%s76_s0 + $0xc] sm:$0xf]  ;;  %v37_v1 = vld [vmem:[%s76_s0 + $0x8] sm:$0xf]  ;;  %v38_v2 = vld [vmem:[%s76_s0 + $0x4] sm:$0xf] }
   0x2   :  { %8 = vst [vmem:[#allocation0 + $0x18] sm:$0xf] %v36_v0  ;;  %13 = vst [vmem:[#allocation0 + $0x10] sm:$0xf] %v37_v1  ;;  %v18_v3 = vld [vmem:[%s76_s0] sm:$0xf] }
   0x3   :  { %17 = vst [vmem:[#allocation0 + $0x8] sm:$0xf] %v38_v2  ;;  %19 = vst [vmem:[#allocation0] sm:$0xf] %v18_v3 }
   0x9   :  { %v27_v5 = vld [vmem:[#allocation0 + $0x10] sm:$0xf]   ;;  %v31_v6 = vld [vmem:[#allocation0 + $0x18] sm:$0xf]  }
   0xa   :  { %v23_v4 = vld [vmem:[#allocation0 + $0x8] sm:$0xf]   ;;  %v20_v7 = vld [vmem:[#allocation0] sm:$0xf]   ;;  %40 = vst [vmem:[%s77_s1 + $0x4] sm:$0xf] %v27_v5  }
   0xb   :  { %39 = vst [vmem:[%s77_s1 + $0x8] sm:$0xf] %v23_v4   ;;  %41 = vst [vmem:[%s77_s1 + $0xc] sm:$0xf] %v31_v6  }
   0xc   :  { %21 = vst [vmem:[%s77_s1] sm:$0xf] %v20_v7  }

// kernel: tile.14
= control target key start
LH: loop header
LB: loop body
LE: loop exit
PB: predicated region body
PF: predicated region fallthrough
CT: control target
= control target key end

     0   :  { %s22_s0 = inlined_call_operand.vmem [shape: f32[2], index: 0, kind: input, shape index: {}]   ;;  %s23_s1 = inlined_call_operand.vmem [shape: f32[8,2], index: 1, kind: output, shape index: {}]  }
   0x1   :  { %v4_v0 = vld [vmem:[%s22_s0] ss:$0 sm:$0xff] }
   0x2   :  { %5 = vst [vmem:[%s23_s1] sm:$0xff] %v4_v0 }

// kernel: mul.23
= control target key start
LH: loop header
LB: loop body
LE: loop exit
PB: predicated region body
PF: predicated region fallthrough
CT: control target
= control target key end

     0   :  { %s67_s10 = smov 14   ;;  %s68_s11 = smov 10   ;;  %vm3_vm0 = vcmask 15360   ;;  %vm9_vm1 = vcmask 130160   ;;  %vm15_vm2 = vcmask 113760   ;;  %vm21_vm3 = vcmask 97360   ;;  %s111_s0 = inlined_call_operand.vmem [shape: f32[8,2], index: 0, kind: input, shape index: {}]   ;;  %s112_s1 = inlined_call_operand.vmem [shape: f32[16], index: 1, kind: output, shape index: {}]  }
   0x1   :  { %v53_v0 = vld [vmem:[%s111_s0 + $0x7] sm:$0x1]   ;;  %v55_v1 = vld [vmem:[%s111_s0 + $0x5] sm:$0x1]   ;;  %v54_v2 = vld [vmem:[%s111_s0 + $0x6] sm:$0x1]  }
   0x2   :  { %7 = vrot.lane.b32.xlu0 %v53_v0, %s67_s10  ;;  %19 = vrot.lane.b32.xlu1 %v55_v1, %s68_s11  ;;  %v56_v3 = vld [vmem:[%s111_s0 + $0x4] sm:$0x1]   ;;  %v2_v4 = vld [vmem:[%s111_s0] sm:$0x1]   ;;  %s69_s18 = smov 12   ;;  %s70_s19 = smov 8  }
   0x3   :  { %4 = vst.msk [vmem:[#allocation0] sm:$0x1] %vm3_vm0, %v2_v4   ;;  %v57_v5 = vld [vmem:[%s111_s0 + $0x3] sm:$0x1]   ;;  %v58_v6 = vld [vmem:[%s111_s0 + $0x2] sm:$0x1]  }
   0x4   :  { %s71_s24 = smov 6   ;;  %s72_s25 = smov 4   ;;  %v59_v7 = vld [vmem:[%s111_s0 + $0x1] sm:$0x1]   ;;  %vm27_vm4 = vcmask 80960   ;;  %vm33_vm5 = vcmask 64560  }
   0x5   :  { %s73_s0 = smov 2   ;;  %vm39_vm6 = vcmask 48160   ;;  %vm45_vm7 = vcmask 31760  }
   0x6   :  { %13 = vrot.lane.b32.xlu0 %v54_v2, %s69_s18  ;;  %25 = vrot.lane.b32.xlu1 %v56_v3, %s70_s19 }
   0xa   :  { %31 = vrot.lane.b32.xlu0 %v57_v5, %s71_s24  ;;  %37 = vrot.lane.b32.xlu1 %v58_v6, %s72_s25 }
   0xe   :  { %43 = vrot.lane.b32.xlu0 %v59_v7, %s73_s0 }
  0x74   :  { %v8_v8 = vpop.permute.xlu0 %7   ;;  %v20_v9 = vpop.permute.xlu1 %19  }
  0x75   :  { %10 = vst.msk [vmem:[#allocation0] sm:$0x1] %vm9_vm1, %v8_v8  }
  0x78   :  { %v14_v10 = vpop.permute.xlu0 %13   ;;  %v26_v11 = vpop.permute.xlu1 %25  }
  0x79   :  { %16 = vst.msk [vmem:[#allocation0] sm:$0x1] %vm15_vm2, %v14_v10  }
  0x7a   :  { %22 = vst.msk [vmem:[#allocation0] sm:$0x1] %vm21_vm3, %v20_v9  }
  0x7b   :  { %28 = vst.msk [vmem:[#allocation0] sm:$0x1] %vm27_vm4, %v26_v11  }
  0x7c   :  { %v32_v12 = vpop.permute.xlu0 %31   ;;  %v38_v13 = vpop.permute.xlu1 %37  }
  0x7d   :  { %34 = vst.msk [vmem:[#allocation0] sm:$0x1] %vm33_vm5, %v32_v12  }
  0x7e   :  { %40 = vst.msk [vmem:[#allocation0] sm:$0x1] %vm39_vm6, %v38_v13  }
  0x80   :  { %v44_v14 = vpop.permute.xlu0 %43  }
  0x81   :  { %46 = vst.msk [vmem:[#allocation0] sm:$0x1] %vm45_vm7, %v44_v14  }
  0x88   :  { %v50_v15 = vld [vmem:[#allocation0] sm:$0x1] }
  0x89   :  { %52 = vst [vmem:[%s112_s1] sm:$0x1] %v50_v15 }

// kernel: rotary_pos_embed.1
= control target key start
LH: loop header
LB: loop body
LE: loop exit
PB: predicated region body
PF: predicated region fallthrough
CT: control target
= control target key end

     0   :  { %s61_s14 = smov 127   ;;  %s62_s15 = smov 1   ;;  %v24_v2 = vlaneseq  ;;  %s107_s0 = inlined_call_operand.vmem [shape: f32[8,256], index: 0, kind: input, shape index: {}]   ;;  %s108_s1 = inlined_call_operand.vmem [shape: f32[8,256], index: 1, kind: input, shape index: {}]   ;;  %s109_s2 = inlined_call_operand.vmem [shape: f32[8,256], index: 2, kind: input, shape index: {}]   ;;  %s110_s3 = inlined_call_operand.vmem [shape: f32[8,256], index: 3, kind: output, shape index: {}]  }
   0x1   :  { %v14_v0 = vld [vmem:[%s107_s0] sm:$0xff]  ;;  %v15_v1 = vld [vmem:[%s107_s0 + $0x8] sm:$0xff] }
   0x2   :  { %29 = vrot.lane.b32.xlu1 %v14_v0, %s61_s14  ;;  %20 = vrot.lane.b32.xlu0 %v14_v0, %s62_s15  ;;  %v25_v3 = vand.u32 127, %v24_v2  ;;  %v16_v9 = vld [vmem:[%s108_s1] sm:$0xff]  ;;  %v17_v10 = vld [vmem:[%s108_s1 + $0x8] sm:$0xff] }
   0x3   :  { %v47_v11 = vmul.f32 %v16_v9, %v14_v0  ;;  %v48_v12 = vmul.f32 %v17_v10, %v15_v1  ;;  %v18_v14 = vld [vmem:[%s109_s2] sm:$0xff]  ;;  %v19_v15 = vld [vmem:[%s109_s2 + $0x8] sm:$0xff] }
   0x4   :  { %v36_v4 = vadd.s32 128, %v25_v3  ;;  %v37_v5 = vand.u32 1, %v25_v3  ;;  %vm33_vm0 = vcmp.lt.s32.totalorder %v25_v3, 127  ;;  %vm26_vm1 = vcmp.lt.s32.totalorder %v25_v3, 1 }
   0x6   :  { %31 = vrot.lane.b32.xlu1 %v15_v1, %s61_s14  ;;  %22 = vrot.lane.b32.xlu0 %v15_v1, %s62_s15  ;;  %v38_v6 = vand.u32 1, %v36_v4  ;;  %vm39_vm2 = vcmp.eq.s32.totalorder %v37_v5, 1 }
   0x8   :  { %vm40_vm3 = vcmp.eq.s32.totalorder %v38_v6, 1 }
  0x74   :  { %v30_v7 = vpop.permute.xlu1 %29  ;;  %v21_v8 = vpop.permute.xlu0 %20 }
  0x78   :  { %v32_v13 = vpop.permute.xlu1 %31  ;;  %v23_v16 = vpop.permute.xlu0 %22 }
  0x79   :  { %v34_v17 = vsel %vm33_vm0, %v30_v7, %v32_v13  ;;  %v35_v18 = vsel %vm33_vm0, %v32_v13, %v30_v7  ;;  %v27_v19 = vsel %vm26_vm1, %v21_v8, %v23_v16  ;;  %v28_v20 = vsel %vm26_vm1, %v23_v16, %v21_v8 }
  0x7a   :  { %v45_v21 = vsel %vm39_vm2, %v28_v20, %v34_v17  ;;  %v46_v22 = vsel %vm40_vm3, %v27_v19, %v35_v18 }
  0x7b   :  { %v49_v23 = vmul.f32 %v45_v21, %v18_v14  ;;  %v50_v24 = vmul.f32 %v46_v22, %v19_v15 }
  0x7d   :  { %v51_v25 = vadd.f32 %v49_v23, %v47_v11  ;;  %v52_v26 = vadd.f32 %v50_v24, %v48_v12 }
  0x7f   :  { %53 = vst [vmem:[%s110_s3] sm:$0xff] %v51_v25  ;;  %54 = vst [vmem:[%s110_s3 + $0x8] sm:$0xff] %v52_v26 }

</bundles_post_ra>
